<compile_context>
chip_gen: v5e
topology: v5e:2x2
jax: 0.10.0
libtpu: 0.0.40
codegen_flags: <defaults>
</compile_context>

<pallas_src>
import jax
import jax.numpy as jnp
from jax import lax
from jax.experimental import pallas as pl
from jax.experimental.pallas import tpu as pltpu


# ----------------------------------------------------------------------------
# Kernel: one batch element per grid step, fully fused bi-modal attention.
# ----------------------------------------------------------------------------
def _bimodal_attn_kernel(m1_ref, m2_ref, out_ref):
    m1 = m1_ref[...].astype(jnp.float32)          # (T, D)
    m2 = m2_ref[...].astype(jnp.float32)          # (T, D)

    # NT matmuls on the MXU: c1 = m1 @ m2^T, c2 = m2 @ m1^T
    nt_dims = (((1,), (1,)), ((), ()))
    c1 = lax.dot_general(m1, m2, nt_dims, preferred_element_type=jnp.float32)  # (T, T)
    c2 = lax.dot_general(m2, m1, nt_dims, preferred_element_type=jnp.float32)  # (T, T)

    def _softmax_rows(c):
        m = jnp.max(c, axis=-1, keepdims=True)
        e = jnp.exp(c - m)
        return e * pl.reciprocal(jnp.sum(e, axis=-1, keepdims=True), approx=False)

    n1 = _softmax_rows(c1)
    n2 = _softmax_rows(c2)

    o1 = jnp.dot(n1, m2, preferred_element_type=jnp.float32)   # (T, D)
    o2 = jnp.dot(n2, m1, preferred_element_type=jnp.float32)   # (T, D)

    a1 = o1 * m1
    a2 = o2 * m2

    # Single lane-dense store of the concatenated result (T, 2D).
    out_ref[...] = jnp.concatenate([a1, a2], axis=-1).astype(out_ref.dtype)


# ----------------------------------------------------------------------------
# Wrapper: mirrors the PyTorch module (takes (T, B, D) tensors, returns (T, B, 2D)).
# ----------------------------------------------------------------------------
def bimodal_attention(mode1_tbd, mode2_tbd):
    T, B, D = mode1_tbd.shape
    assert mode2_tbd.shape == (T, B, D)

    # __init__ permute(1, 0, 2): (T, B, D) -> (B, T, D)
    m1 = jnp.transpose(mode1_tbd, (1, 0, 2))
    m2 = jnp.transpose(mode2_tbd, (1, 0, 2))

    out_btd = pl.pallas_call(
        _bimodal_attn_kernel,
        out_shape=jax.ShapeDtypeStruct((B, T, 2 * D), mode1_tbd.dtype),
        grid=(B,),
        in_specs=[
            pl.BlockSpec((None, T, D), lambda b: (b, 0, 0)),
            pl.BlockSpec((None, T, D), lambda b: (b, 0, 0)),
        ],
        out_specs=pl.BlockSpec((None, T, 2 * D), lambda b: (b, 0, 0)),
        compiler_params=pltpu.CompilerParams(
            dimension_semantics=("parallel",)),
    )(m1, m2)

    # final permute(1, 0, 2): (B, T, 2D) -> (T, B, 2D)
    return jnp.transpose(out_btd, (1, 0, 2))


# ----------------------------------------------------------------------------
# Pure-JAX reference of the torch math (for a correctness check).
# ----------------------------------------------------------------------------
def _ref_bimodal(mode1_tbd, mode2_tbd):
    m1 = jnp.transpose(mode1_tbd, (1, 0, 2))
    m2 = jnp.transpose(mode2_tbd, (1, 0, 2))
    c1 = jnp.einsum("btd,bsd->bts", m1, m2)
    c2 = jnp.einsum("btd,bsd->bts", m2, m1)
    n1 = jax.nn.softmax(c1, axis=-1)
    n2 = jax.nn.softmax(c2, axis=-1)
    o1 = jnp.einsum("bts,bsd->btd", n1, m2)
    o2 = jnp.einsum("bts,bsd->btd", n2, m1)
    a1 = o1 * m1
    a2 = o2 * m2
    return jnp.transpose(jnp.concatenate([a1, a2], axis=-1), (1, 0, 2))


# ----------------------------------------------------------------------------
if __name__ == "__main__":
    key = jax.random.PRNGKey(0)
    T, B, D = 16, 4, 64          # seq, batch, feature; 2*D = 128 -> lane-dense output
    k1, k2 = jax.random.split(key)

    mode1 = jax.random.normal(k1, (T, B, D), jnp.float32)
    mode2 = jax.random.normal(k2, (T, B, D), jnp.float32)

    fwd = jax.jit(bimodal_attention)
    out = fwd(mode1, mode2)
    jax.block_until_ready(out)

    ref = _ref_bimodal(mode1, mode2)
    assert out.shape == (T, B, 2 * D)
    assert jnp.allclose(out, ref, atol=1e-4, rtol=1e-4), (
        float(jnp.max(jnp.abs(out - ref))))

    print("KERNEL_OK")
</pallas_src>

<mosaic_0001>
module attributes {stable_mosaic.version = 11 : i64} {
  func.func @_bimodal_attn_kernel(%arg0: i32, %arg1: memref<1x16x64xf32, #tpu.memory_space<vmem>>, %arg2: memref<1x16x64xf32, #tpu.memory_space<vmem>>, %arg3: memref<1x16x128xf32, #tpu.memory_space<vmem>>) attributes {dimension_semantics = [#tpu.dimension_semantics<parallel>], iteration_bounds = array<i64: 4>, scalar_prefetch = 0 : i64, scratch_operands = 0 : i64, tpu.core_type = #tpu.core_type<tc>, window_params = [{transform_indices = @transform_0, window_bounds = array<i64: 1, 16, 64>}, {transform_indices = @transform_1, window_bounds = array<i64: 1, 16, 64>}, {transform_indices = @transform_2, window_bounds = array<i64: 1, 16, 128>}]} {
    %c0 = arith.constant 0 : index
    %c0_0 = arith.constant 0 : index
    %c0_1 = arith.constant 0 : index
    %0 = vector.load %arg1[%c0, %c0_0, %c0_1] : memref<1x16x64xf32, #tpu.memory_space<vmem>>, vector<1x16x64xf32>
    %1 = vector.shape_cast %0 : vector<1x16x64xf32> to vector<16x64xf32>
    %c0_2 = arith.constant 0 : index
    %c0_3 = arith.constant 0 : index
    %c0_4 = arith.constant 0 : index
    %2 = vector.load %arg2[%c0_2, %c0_3, %c0_4] : memref<1x16x64xf32, #tpu.memory_space<vmem>>, vector<1x16x64xf32>
    %3 = vector.shape_cast %2 : vector<1x16x64xf32> to vector<16x64xf32>
    %cst = arith.constant dense<0.000000e+00> : vector<16x16xf32>
    %4 = tpu.matmul %1, %3, %cst {dimension_numbers = #tpu.dot_dimension_numbers<[1], [1], [0], [0], [0, 0, 1, 0], [], []>} : vector<16x64xf32>, vector<16x64xf32>, vector<16x16xf32> -> vector<16x16xf32>
    %cst_5 = arith.constant dense<0.000000e+00> : vector<16x16xf32>
    %5 = tpu.matmul %3, %1, %cst_5 {dimension_numbers = #tpu.dot_dimension_numbers<[1], [1], [0], [0], [0, 0, 1, 0], [], []>} : vector<16x64xf32>, vector<16x64xf32>, vector<16x16xf32> -> vector<16x16xf32>
    %cst_6 = arith.constant dense<0xFF800000> : vector<16xf32>
    %6 = vector.multi_reduction <maximumf>, %4, %cst_6 [1] : vector<16x16xf32> to vector<16xf32>
    %7 = vector.shape_cast %6 : vector<16xf32> to vector<16x1xf32>
    %8 = vector.broadcast %7 : vector<16x1xf32> to vector<16x16xf32>
    %9 = arith.subf %4, %8 : vector<16x16xf32>
    %10 = math.exp %9 : vector<16x16xf32>
    %cst_7 = arith.constant dense<0.000000e+00> : vector<16xf32>
    %11 = vector.multi_reduction <add>, %10, %cst_7 [1] : vector<16x16xf32> to vector<16xf32>
    %12 = vector.shape_cast %11 : vector<16xf32> to vector<16x1xf32>
    %13 = tpu.reciprocal %12 : vector<16x1xf32> -> vector<16x1xf32>
    %14 = vector.broadcast %13 : vector<16x1xf32> to vector<16x16xf32>
    %15 = arith.mulf %10, %14 : vector<16x16xf32>
    %cst_8 = arith.constant dense<0xFF800000> : vector<16xf32>
    %16 = vector.multi_reduction <maximumf>, %5, %cst_8 [1] : vector<16x16xf32> to vector<16xf32>
    %17 = vector.shape_cast %16 : vector<16xf32> to vector<16x1xf32>
    %18 = vector.broadcast %17 : vector<16x1xf32> to vector<16x16xf32>
    %19 = arith.subf %5, %18 : vector<16x16xf32>
    %20 = math.exp %19 : vector<16x16xf32>
    %cst_9 = arith.constant dense<0.000000e+00> : vector<16xf32>
    %21 = vector.multi_reduction <add>, %20, %cst_9 [1] : vector<16x16xf32> to vector<16xf32>
    %22 = vector.shape_cast %21 : vector<16xf32> to vector<16x1xf32>
    %23 = tpu.reciprocal %22 : vector<16x1xf32> -> vector<16x1xf32>
    %24 = vector.broadcast %23 : vector<16x1xf32> to vector<16x16xf32>
    %25 = arith.mulf %20, %24 : vector<16x16xf32>
    %cst_10 = arith.constant dense<0.000000e+00> : vector<16x64xf32>
    %26 = tpu.matmul %15, %3, %cst_10 {dimension_numbers = #tpu.dot_dimension_numbers<[1], [0], [0], [1], [0, 0, 1, 1], [], []>} : vector<16x16xf32>, vector<16x64xf32>, vector<16x64xf32> -> vector<16x64xf32>
    %cst_11 = arith.constant dense<0.000000e+00> : vector<16x64xf32>
    %27 = tpu.matmul %25, %1, %cst_11 {dimension_numbers = #tpu.dot_dimension_numbers<[1], [0], [0], [1], [0, 0, 1, 1], [], []>} : vector<16x16xf32>, vector<16x64xf32>, vector<16x64xf32> -> vector<16x64xf32>
    %28 = arith.mulf %26, %1 : vector<16x64xf32>
    %29 = arith.mulf %27, %3 : vector<16x64xf32>
    %30 = tpu.concatenate %28, %29 in 1 : vector<16x64xf32>, vector<16x64xf32> -> vector<16x128xf32>
    %c0_12 = arith.constant 0 : index
    %c0_13 = arith.constant 0 : index
    %c0_14 = arith.constant 0 : index
    %31 = vector.load %arg3[%c0_12, %c0_13, %c0_14] : memref<1x16x128xf32, #tpu.memory_space<vmem>>, vector<1x16x128xf32>
    %32 = vector.shape_cast %31 : vector<1x16x128xf32> to vector<16x128xf32>
    %33 = vector.shape_cast %30 : vector<16x128xf32> to vector<1x16x128xf32>
    tpu.vector_store %arg3[%c0_12, %c0_13, %c0_14], %33 {strides = array<i32>} : memref<1x16x128xf32, #tpu.memory_space<vmem>>, vector<1x16x128xf32>,
    return
  }
  func.func @transform_0(%arg0: i32) -> (i32, i32, i32) {
    %c0_i32 = arith.constant 0 : i32
    %c0_i32_0 = arith.constant 0 : i32
    %c0_i32_1 = arith.constant 0 : i32
    return %arg0, %c0_i32, %c0_i32_0 : i32, i32, i32
  }
  func.func @transform_1(%arg0: i32) -> (i32, i32, i32) {
    %c0_i32 = arith.constant 0 : i32
    %c0_i32_0 = arith.constant 0 : i32
    %c0_i32_1 = arith.constant 0 : i32
    return %arg0, %c0_i32, %c0_i32_0 : i32, i32, i32
  }
  func.func @transform_2(%arg0: i32) -> (i32, i32, i32) {
    %c0_i32 = arith.constant 0 : i32
    %c0_i32_0 = arith.constant 0 : i32
    %c0_i32_1 = arith.constant 0 : i32
    return %arg0, %c0_i32, %c0_i32_0 : i32, i32, i32
  }
}

</mosaic_0001>

<bundles_post_ra>
// kernel: bimodal_attention.1
= control target key start
LH: loop header
LB: loop body
LE: loop exit
PB: predicated region body
PF: predicated region fallthrough
CT: control target
= control target key end

     0   :  { %s542_s9 = smov 0   ;;  %s621_s0 = inlined_call_operand.vmem [shape: f32[4,16,64], index: 0, kind: input, shape index: {}]   ;;  %s622_s1 = inlined_call_operand.vmem [shape: f32[4,16,64], index: 1, kind: input, shape index: {}]   ;;  %s623_s2 = inlined_call_operand.vmem [shape: f32[4,16,128], index: 2, kind: output, shape index: {}]  }
   0x1 LB: > { %s465_s10 = sadd.s32 4294967295, %s524_s9   ;;  %p469_p0 = scmp.ge.s32.totalorder %s524_s9, 1  ;;  %s524_s9 = sphi %s542_s9, %s12_s9  }
   0x2   : > { %p122_p1 = scmp.lt.s32.totalorder %s524_s9, 5 }
   0x4   : > { %p123_p2 = pnand %p469_p0, %p122_p1 }
   0x5   : > { %p149_p3 = scmp.lt.s32.totalorder (!%p123_p2), %s465_s10, 3  ;;  %s526_s18 = smov (!%p123_p2), 64  }
   0x6   : > { %126 = sbr.rel (%p123_p2) target bundleno = 672 (0x2a0), region = 28 }
   0xb   : > { %s625_s10 = smov (!%p149_p3, %s465_s10), 3  ;;  %vm168_vm0 = vcmask 523264   ;;  %vm227_vm1 = vcmask 130048  }
   0xc   : > { %s550_s11 = sshll.u32 %s625_s10, 4 }
   0xd   : > { %s158_s14 = scalar_lea.vmem %s622_s1, %s550_s11  ;;  %s153_s17 = scalar_lea.vmem %s621_s0, %s550_s11 }
   0xe   : > { %v560_v0 = vld [vmem:[%s158_s14 + $0x8] sm:$0xff]  ;;  %v568_v2 = vld [vmem:[%s158_s14] sm:$0xff]  ;;  %s163_s21 = scalar_lea.vmem %s623_s2, %s550_s11 }
   0xf   : > { %v562_v1 = vld [vmem:[%s153_s17 + $0x8] sm:$0xff]  ;;  %476 = vmatpush.xpose.msk.msra.mxu0 %vm168_vm0, %v560_v0  ;;  %v570_v3 = vld [vmem:[%s153_s17] sm:$0xff]  ;;  %344 = vmatpush.msra.mxu2 %v560_v0 }
  0x10   : > { %480 = vmatpush.xpose.msk.msra.mxu1 %vm168_vm0, %v562_v1  ;;  %373 = vmatpush.msra.mxu3 %v562_v1 }
  0x11   : > { %345 = vmatpush.msra.mxu2 %v568_v2 }
  0x12   : > { %374 = vmatpush.msra.mxu3 %v570_v3 }
  0x13   : > { %477 = vmatpush.xpose.msk.msra.mxu0 %vm168_vm0, %v568_v2 }
  0x14   : > { %481 = vmatpush.xpose.msk.msra.mxu1 %vm168_vm0, %v570_v3 }
  0x16   : > { %478 = vmatmul.msk.f32.vlgmr.msra.gmra.mxu0 %vm168_vm0, %v570_v3 }
  0x17   : > { %482 = vmatmul.msk.f32.vlgmr.msra.gmra.mxu1 %vm168_vm0, %v568_v2 }
  0x1e   : > { %479 = vmatmul.msk.f32.gmra.mxu0 %vm168_vm0, %v562_v1 }
  0x1f   : > { %483 = vmatmul.msk.f32.gmra.mxu1 %vm168_vm0, %v560_v0 }
  0x93   : > { %v198_v4 = vpop.f32.mrf.mxu0 }
  0x94   : > { %v221_v5 = vpop.f32.mrf.mxu1  ;;  %v228_v7 = vsel %vm227_vm1, %v198_v4, -inf }
  0x95   : > { %v276_v6 = vsel %vm227_vm1, %v221_v5, -inf  ;;  %229 = vmax.xlane.f32.xlu1 %v228_v7 }
  0x96   : > { %277 = vmax.xlane.f32.xlu0 %v276_v6 }
  0x9b   : > { %v201_v8 = vpop.f32.mrf.mxu0 }
  0x9c   : > { %v224_v9 = vpop.f32.mrf.mxu1  ;;  %v231_v11 = vsel %vm227_vm1, %v201_v8, -inf }
  0x9d   : > { %v279_v10 = vsel %vm227_vm1, %v224_v9, -inf  ;;  %232 = vmax.xlane.f32.xlu1 %v231_v11 }
  0x9e   : > { %280 = vmax.xlane.f32.xlu0 %v279_v10 }
 0x108   : > { %v230_v13 = vpop.xlane.xlu1 %229 }
 0x109   : > { %v278_v12 = vpop.xlane.xlu0 %277  ;;  %v234_v15 = vsub.f32 %v198_v4, %v230_v13 }
 0x10a   : > { %v282_v14 = vsub.f32 %v221_v5, %v278_v12 }
 0x10b   : > { %v236_v17 = vmul.f32 1.442695, %v234_v15 }
 0x10c   : > { %v284_v16 = vmul.f32 1.442695, %v282_v14 }
 0x10e   : > { %502 = vpow2.f32 %v284_v16 }
 0x10f   : > { %504 = vpow2.f32 %v236_v17 }
 0x110   : > { %v233_v19 = vpop.xlane.xlu1 %232 }
 0x111   : > { %v281_v18 = vpop.xlane.xlu0 %280  ;;  %v235_v21 = vsub.f32 %v201_v8, %v233_v19 }
 0x112   : > { %v283_v20 = vsub.f32 %v224_v9, %v281_v18 }
 0x113   : > { %v238_v24 = vmul.f32 1.442695, %v235_v21 }
 0x114   : > { %v503_v22 = vpop.eup %502  ;;  %v286_v23 = vmul.f32 1.442695, %v283_v20 }
 0x115   : > { %v505_v25 = vpop.eup %504  ;;  %v288_v26 = vsel %vm227_vm1, %v503_v22, 0.0 }
 0x116   : > { %506 = vpow2.f32 %v286_v23  ;;  %289 = vadd.xlane.f32.xlu2 %v288_v26  ;;  %v240_v27 = vsel %vm227_vm1, %v505_v25, 0.0 }
 0x117   : > { %508 = vpow2.f32 %v238_v24  ;;  %241 = vadd.xlane.f32.xlu0 %v240_v27 }
 0x11c   : > { %v594_v28 = vpop.eup %506 }
 0x11d   : > { %v596_v29 = vpop.eup %508  ;;  %v291_v30 = vsel %vm227_vm1, %v594_v28, 0.0 }
 0x11e   : > { %292 = vadd.xlane.f32.xlu2 %v291_v30  ;;  %v243_v31 = vsel %vm227_vm1, %v596_v29, 0.0 }
 0x11f   : > { %244 = vadd.xlane.f32.xlu1 %v243_v31 }
 0x189   : > { %v290_v32 = vpop.xlane.xlu2 %289 }
 0x18a   : > { %510 = vrcp.f32 %v290_v32  ;;  %v242_v33 = vpop.xlane.xlu0 %241  ;;  %v305_v41 = vand.u32 2147483648, %v290_v32  ;;  %v303_v45 = vand.u32 2147483647, %v290_v32  ;;  %vm299_vm4 = vweird.f32 %v290_v32 }
 0x18b   : > { %512 = vrcp.f32 %v242_v33  ;;  %v257_v44 = vand.u32 2147483648, %v242_v33  ;;  %v255_v47 = vand.u32 2147483647, %v242_v33  ;;  %vm251_vm5 = vweird.f32 %v242_v33 }
 0x18c   : > { %v306_v50 = vor.u32 1.1754944e-38, %v305_v41  ;;  %vm304_vm8 = vcmp.eq.f32.partialorder %v303_v45, 8.507059e+37 }
 0x18d   : > { %v258_v53 = vor.u32 1.1754944e-38, %v257_v44  ;;  %vm256_vm9 = vcmp.eq.f32.partialorder %v255_v47, 8.507059e+37 }
 0x190   : > { %v511_v34 = vpop.eup %510 }
 0x191   : > { %v513_v35 = vpop.eup %512  ;;  %v295_v36 = vmul.f32 %v511_v34, %v290_v32  ;;  %v293_v37 = vpop.xlane.xlu2 %292  ;;  %vm300_vm2 = vweird.f32 %v511_v34 }
 0x192   : > { %v247_v38 = vmul.f32 %v513_v35, %v242_v33  ;;  %514 = vrcp.f32 %v293_v37  ;;  %v245_v39 = vpop.xlane.xlu1 %244  ;;  %vm252_vm3 = vweird.f32 %v513_v35  ;;  %vm301_vm6 = vmor %vm299_vm4, %vm300_vm2  ;;  %v319_v62 = vand.u32 2147483648, %v293_v37 }
 0x193   : > { %v296_v40 = vsub.f32 1.0, %v295_v36  ;;  %516 = vrcp.f32 %v245_v39  ;;  %vm253_vm7 = vmor %vm251_vm5, %vm252_vm3  ;;  %v271_v6 = vand.u32 2147483648, %v245_v39  ;;  %v317_v7 = vand.u32 2147483647, %v293_v37 }
 0x194   : > { %v248_v42 = vsub.f32 1.0, %v247_v38  ;;  %v269_v9 = vand.u32 2147483647, %v245_v39  ;;  %vm313_vm12 = vweird.f32 %v293_v37  ;;  %v320_v11 = vor.u32 1.1754944e-38, %v319_v62 }
 0x195   : > { %v297_v43 = vmul.f32 %v511_v34, %v296_v40  ;;  %vm265_vm13 = vweird.f32 %v245_v39  ;;  %v272_v13 = vor.u32 1.1754944e-38, %v271_v6  ;;  %vm318_vm2 = vcmp.eq.f32.partialorder %v317_v7, 8.507059e+37 }
 0x196   : > { %v249_v46 = vmul.f32 %v513_v35, %v248_v42  ;;  %vm270_vm3 = vcmp.eq.f32.partialorder %v269_v9, 8.507059e+37 }
 0x197   : > { %v298_v48 = vadd.f32 %v511_v34, %v297_v43 }
 0x198   : > { %v515_v49 = vpop.eup %514  ;;  %v250_v51 = vadd.f32 %v513_v35, %v249_v46 }
 0x199   : > { %v517_v52 = vpop.eup %516  ;;  %v309_v54 = vmul.f32 %v515_v49, %v293_v37  ;;  %v302_v55 = vsel %vm301_vm6, %v511_v34, %v298_v48  ;;  %vm314_vm10 = vweird.f32 %v515_v49 }
 0x19a   : > { %v261_v56 = vmul.f32 %v517_v52, %v245_v39  ;;  %v254_v57 = vsel %vm253_vm7, %v513_v35, %v250_v51  ;;  %v307_v58 = vsel %vm304_vm8, %v306_v50, %v302_v55  ;;  %vm266_vm11 = vweird.f32 %v517_v52  ;;  %vm315_vm14 = vmor %vm313_vm12, %vm314_vm10 }
 0x19b   : > { %v310_v59 = vsub.f32 1.0, %v309_v54  ;;  %v259_v60 = vsel %vm256_vm9, %v258_v53, %v254_v57  ;;  %v322_v61 = vmul.f32 %v503_v22, %v307_v58  ;;  %vm267_vm15 = vmor %vm265_vm13, %vm266_vm11 }
 0x19c   : > { %v262_v63 = vsub.f32 1.0, %v261_v56  ;;  %v274_v4 = vmul.f32 %v505_v25, %v259_v60 }
 0x19d   : > { %v311_v5 = vmul.f32 %v515_v49, %v310_v59  ;;  %486 = vmatmul.msk.f32.vlgmr.msra.gmra.mxu3 %vm227_vm1, %v322_v61 }
 0x19e   : > { %v263_v8 = vmul.f32 %v517_v52, %v262_v63  ;;  %484 = vmatmul.msk.f32.vlgmr.msra.gmra.mxu2 %vm227_vm1, %v274_v4 }
 0x19f   : > { %v312_v10 = vadd.f32 %v515_v49, %v311_v5 }
 0x1a0   : > { %v264_v12 = vadd.f32 %v517_v52, %v263_v8 }
 0x1a1   : > { %v316_v14 = vsel %vm315_vm14, %v515_v49, %v312_v10 }
 0x1a2   : > { %v268_v15 = vsel %vm267_vm15, %v517_v52, %v264_v12  ;;  %v321_v16 = vsel %vm318_vm2, %v320_v11, %v316_v14 }
 0x1a3   : > { %v273_v17 = vsel %vm270_vm3, %v272_v13, %v268_v15  ;;  %v323_v18 = vmul.f32 %v594_v28, %v321_v16 }
 0x1a4   : > { %v275_v19 = vmul.f32 %v596_v29, %v273_v17 }
 0x1a5   : > { %487 = vmatmul.msk.f32.gmra.mxu3 %vm227_vm1, %v323_v18 }
 0x1a6   : > { %485 = vmatmul.msk.f32.gmra.mxu2 %vm227_vm1, %v275_v19 }
 0x220   : > { %v376_v20 = vpop.f32.mrf.mxu3 }
 0x221   : > { %v384_v21 = vmul.f32 %v376_v20, %v568_v2  ;;  %v347_v24 = vpop.f32.mrf.mxu2 }
 0x222   : > { %v382_v25 = vmul.f32 %v347_v24, %v570_v3 }
 0x223   : > { %388 = vrot.lane.b32.xlu2 %v384_v21, %s526_s18 }
 0x228   : > { %v379_v22 = vpop.f32.mrf.mxu3 }
 0x229   : > { %v385_v23 = vmul.f32 %v379_v22, %v560_v0  ;;  %v350_v28 = vpop.f32.mrf.mxu2 }
 0x22a   : > { %v383_v2 = vmul.f32 %v350_v28, %v562_v1 }
 0x22b   : > { %390 = vrot.lane.b32.xlu0 %v385_v23, %s526_s18 }
 0x27d   : > { %v389_v26 = vpop.permute.xlu2 %388 }
 0x27e   : > { %v394_v27 = vsel %vm168_vm0, %v382_v25, %v389_v26 }
 0x27f   : > { %396 = vst [vmem:[%s163_s21] sm:$0xff] %v394_v27 }
 0x29d   : > { %v391_v29 = vpop.permute.xlu0 %390 }
 0x29e   : > { %v395_v30 = vsel %vm168_vm0, %v383_v2, %v391_v29 }
 0x29f   : > { %397 = vst [vmem:[%s163_s21 + $0x8] sm:$0xff] %v395_v30 }
 0x2a0 PF: > { %s12_s9 = sadd.s32 1, %s524_s9  }
 0x2a1   : > { %p9_p4 = scmp.ge.s32.totalorder %s12_s9, 6  }
 0x2a3   :  { %11 = sbr.rel (!%p9_p4) target bundleno = 1 (0x1), region = 61 }

</bundles_post_ra>
